<compile_context>
chip_gen: v7x
topology: tpu7x:2x2x1
jax: 0.10.0
libtpu: 0.0.40
codegen_flags: <defaults>
</compile_context>

<pallas_src>
import jax
import jax.numpy as jnp
from jax.experimental import pallas as pl
from jax.experimental.pallas import tpu as pltpu


def _round_up(x, m):
    return ((x + m - 1) // m) * m


def _sublane_quantum(dtype):
    itemsize = jnp.dtype(dtype).itemsize
    if itemsize >= 4:
        return 8
    if itemsize == 2:
        return 16
    return 32


def _input_budget_bytes():
    """Bytes allowed for BOTH double-buffered input tiles (generation aware)."""
    try:
        cap = int(pltpu.get_tpu_info().vmem_capacity_bytes)
    except Exception:
        cap = 64 * 1024 * 1024
    if cap >= 96 * 1024 * 1024:          # v5e / v6e: 128 MiB physical VMEM
        return 56 * 1024 * 1024
    return 28 * 1024 * 1024              # v7x: 64 MiB physical VMEM


def _choose_row_tile(rows, hw, dtype, budget):
    """Largest sublane-quantum row tile whose double-buffered copies fit budget."""
    q = _sublane_quantum(dtype)
    if rows <= q:
        return rows                       # block == full dim: always legal
    itemsize = jnp.dtype(dtype).itemsize
    hw_padded = _round_up(hw, 128)        # real VMEM footprint is lane-padded
    # 2 double-buffered input copies + (sub-f32 only) one f32 temp for the
    # f32-accumulated reduce of the current tile.
    per_row = 2 * hw_padded * itemsize + (hw_padded * 4 if itemsize < 4 else 0)
    max_by_vmem = max(q, (budget // per_row // q) * q)
    tr = min(max_by_vmem, _round_up(rows, q))
    # Ensure >= 2 grid steps (v7x 2-TC sharding + pipeline overlap).
    half = _round_up((rows + 1) // 2, q)
    tr = min(tr, half)
    return max(q, tr)


def _gap_kernel(x_ref, o_ref):
    # x_ref: (tr, hw) tile in VMEM; o_ref: (tr, 1) per-row means.
    hw = x_ref.shape[-1]
    # Lane-axis reduce on XLU/VPU with f32 accumulation (MXU stays idle: this
    # kernel is HBM-bandwidth bound and the streamed tile must not become the
    # MXU's stationary/transposed operand).
    s = jnp.sum(x_ref[...].astype(jnp.float32), axis=-1, keepdims=True)
    o_ref[...] = (s * (1.0 / float(hw))).astype(o_ref.dtype)


def global_avg_pool2d(x, keep_dim=True):
    """x: (N, C, H, W) -> (N, C, 1, 1) if keep_dim else (N, C)."""
    N, C, H, W = x.shape
    rows = N * C
    hw = H * W
    itemsize = jnp.dtype(x.dtype).itemsize

    x2d = x.reshape(rows, hw)
    budget = _input_budget_bytes()
    tr = _choose_row_tile(rows, hw, x.dtype, budget)
    num_tiles = pl.cdiv(rows, tr)

    # Padding-corrected VMEM request: double-buffered input + f32 temp for
    # sub-f32 inputs + double-buffered (lane-padded) output + modest headroom.
    hw_padded = _round_up(hw, 128)
    tile_in_bytes = tr * hw_padded * itemsize
    f32_temp = tr * hw_padded * 4 if itemsize < 4 else 0
    out_bytes = 2 * tr * 128 * max(itemsize, 4)
    needed = 2 * tile_in_bytes + f32_temp + out_bytes + (4 << 20)
    vmem_limit = int(min(needed, 100 * 1024 * 1024))

    cost = pl.CostEstimate(
        flops=rows * hw,
        transcendentals=0,
        bytes_accessed=rows * hw * itemsize + rows * itemsize)

    out = pl.pallas_call(
        _gap_kernel,
        out_shape=jax.ShapeDtypeStruct((num_tiles * tr, 1), x.dtype),
        grid_spec=pl.GridSpec(
            grid=(num_tiles,),
            in_specs=[pl.BlockSpec((tr, hw), lambda i: (i, 0))],
            out_specs=pl.BlockSpec((tr, 1), lambda i: (i, 0)),
        ),
        compiler_params=pltpu.CompilerParams(
            dimension_semantics=("parallel",),
            vmem_limit_bytes=vmem_limit),
        cost_estimate=cost,
    )(x2d)

    # Rows beyond `rows` in the last tile are padding (garbage) -> slice away.
    flat = out.reshape(num_tiles * tr)[:rows]
    if keep_dim:
        return flat.reshape(N, C, 1, 1)
    return flat.reshape(N, C)


if __name__ == "__main__":
    key = jax.random.PRNGKey(0)
    k0, k1 = jax.random.split(key)

    # Case 1: small canonical shape.
    N, C, H, W = 2, 4, 16, 16
    x = jax.random.normal(k0, (N, C, H, W), dtype=jnp.float32)
    out = jax.block_until_ready(global_avg_pool2d(x, keep_dim=True))
    ref = x.mean(axis=3, keepdims=True).mean(axis=2, keepdims=True)
    assert out.shape == (N, C, 1, 1), out.shape
    assert jnp.allclose(out, ref, atol=1e-5, rtol=1e-5)

    out_nd = jax.block_until_ready(global_avg_pool2d(x, keep_dim=False))
    assert out_nd.shape == (N, C)
    assert jnp.allclose(out_nd, ref.reshape(N, C), atol=1e-5, rtol=1e-5)

    # Case 2: non-multiple-of-8 rows and hw (exercises the padded last tile).
    N2, C2, H2, W2 = 3, 5, 7, 7
    x2 = jax.random.normal(k1, (N2, C2, H2, W2), dtype=jnp.float32)
    out2 = jax.block_until_ready(global_avg_pool2d(x2, keep_dim=True))
    ref2 = x2.mean(axis=3, keepdims=True).mean(axis=2, keepdims=True)
    assert out2.shape == (N2, C2, 1, 1), out2.shape
    assert jnp.allclose(out2, ref2, atol=1e-5, rtol=1e-5)

    print("KERNEL_OK")
</pallas_src>

<mosaic_0001>
module attributes {stable_mosaic.version = 11 : i64} {
  func.func @_gap_kernel(%arg0: i32, %arg1: memref<8x256xf32, #tpu.memory_space<vmem>>, %arg2: memref<8x1xf32, #tpu.memory_space<vmem>>) attributes {dimension_semantics = [#tpu.dimension_semantics<parallel>], iteration_bounds = array<i64: 1>, scalar_prefetch = 0 : i64, scratch_operands = 0 : i64, tpu.core_type = #tpu.core_type<tc>, window_params = [{transform_indices = @transform_0, window_bounds = array<i64: 8, 256>}, {transform_indices = @transform_1, window_bounds = array<i64: 8, 1>}]} {
    %c0 = arith.constant 0 : index
    %c0_0 = arith.constant 0 : index
    %0 = vector.load %arg1[%c0, %c0_0] : memref<8x256xf32, #tpu.memory_space<vmem>>, vector<8x256xf32>
    %cst = arith.constant dense<0.000000e+00> : vector<8xf32>
    %1 = vector.multi_reduction <add>, %0, %cst [1] : vector<8x256xf32> to vector<8xf32>
    %2 = vector.shape_cast %1 : vector<8xf32> to vector<8x1xf32>
    %cst_1 = arith.constant 3.906250e-03 : f32
    %3 = vector.broadcast %cst_1 : f32 to vector<8x1xf32>
    %4 = arith.mulf %2, %3 : vector<8x1xf32>
    %c0_2 = arith.constant 0 : index
    %c0_3 = arith.constant 0 : index
    %5 = vector.load %arg2[%c0_2, %c0_3] : memref<8x1xf32, #tpu.memory_space<vmem>>, vector<8x1xf32>
    tpu.vector_store %arg2[%c0_2, %c0_3], %4 {strides = array<i32>} : memref<8x1xf32, #tpu.memory_space<vmem>>, vector<8x1xf32>,
    return
  }
  func.func @transform_0(%arg0: i32) -> (i32, i32) {
    %c0_i32 = arith.constant 0 : i32
    %c0_i32_0 = arith.constant 0 : i32
    return %arg0, %c0_i32 : i32, i32
  }
  func.func @transform_1(%arg0: i32) -> (i32, i32) {
    %c0_i32 = arith.constant 0 : i32
    %c0_i32_0 = arith.constant 0 : i32
    return %arg0, %c0_i32 : i32, i32
  }
}

</mosaic_0001>

<bundles_post_ra>
// kernel: tpu_custom_call.1
= control target key start
LH: loop header
LB: loop body
LE: loop exit
PB: predicated region body
PF: predicated region fallthrough
CT: control target
= control target key end

     0   :  { %6 = vsyncpa [#allocation3], 0  ;;  %s58_s6 = smov [#allocation2]   ;;  %s84_s0 = inlined_call_operand.hbm [shape: f32[8,256], index: 0, kind: input, shape index: {}]   ;;  %s85_s1 = inlined_call_operand.vmem [shape: f32[8,1], index: 1, kind: output, shape index: {}]  }
   0x1   :  { %s13_s7 = sshll.u32 %s58_s6, 4  ;;  %s34_s10 = scalar_lea.hbm %s84_s0, 256  ;;  %s14_s7 = int_to_ptr.vmem [resolvable:$true] %s13_s7 }
   0x2   :  { %p35_p0 = scmp.ne.s32.totalorder %s84_s0, %s34_s10  ;;  %p38_p1 = scmp.lt.u32.totalorder %s34_s10, %s84_s0 }
   0x4   :  { %p40_p2 = pnand %p38_p1, %p35_p0 }
   0x6   :  { %43 = shalt.err (!%p40_p2)
}
   0x7   :  { %s44_s15 = scalar_lea.vmem %s14_s7, 256  ;;  %p49_p4 = scmp.lt.s32.totalorder %s14_s7, %s14_s7 }
   0x8   :  { %p45_p3 = scmp.ne.s32.totalorder %s14_s7, %s44_s15  ;;  %p50_p5 = scmp.lt.s32.totalorder %s44_s15, %s44_s15 }
   0xa   :  { %p51_p6 = por %p50_p5, %p49_p4 }
   0xc   :  { %p52_p7 = pnand %p51_p6, %p45_p3 }
   0xe   :  { %55 = shalt.err (!%p52_p7)
}
   0xf   :  { %16 = dma.hbm_to_vmem [thread:$0]  %s84_s0, 256, %s14_s7, [#allocation3]  }
  0x10   :  { %56 = dma.done.wait [#allocation3], 256  }
  0x11   :  { %57 = vsyncadd [#allocation3], 4294967040  ;;  %v20_v0 = vld [vmem:[#allocation2] sm:$0xff]  ;;  %v21_v1 = vld [vmem:[#allocation2 + $0x8] sm:$0xff]  ;;  %vm26_vm0 = vcmask 7168  }
  0x12   :  { %v22_v2 = vadd.f32 %v21_v1, %v20_v0 }
  0x14   :  { %23 = vadd.xlane.f32.xlu0 %v22_v2 }
  0xa1   :  { %v24_v3 = vpop.xlane.xlu0 %23 }
  0xa2   :  { %v25_v4 = vmul.f32 0.00390625, %v24_v3 }
  0xa4   :  { %27 = vst.msk [vmem:[%s85_s1] sm:$0xff] %vm26_vm0, %v25_v4 }
  0xa5   :  { %32 = vsyncpa [#allocation3], 1 }

</bundles_post_ra>
